<compile_context>
chip_gen: v7x
topology: tpu7x:2x2x1
jax: 0.10.0
libtpu: 0.0.40
codegen_flags: <defaults>
</compile_context>

<pallas_src>
import functools

import jax
import jax.numpy as jnp
from jax.experimental import pallas as pl
from jax.experimental.pallas import tpu as pltpu

_VMEM_BUDGET = 8 * 1024 * 1024     # target total (double-buffered) footprint per kernel
_VMEM_LIMIT = 32 * 1024 * 1024     # explicit scoped-VMEM limit (safe on v5e/v6e/v7x)


def _pick_tile(hw, bytes_per_lane, budget=_VMEM_BUDGET):
    """Lane-axis tile size.

    Full extent when the whole lane axis fits the budget (always a legal block),
    otherwise the largest multiple of 128 whose total footprint stays under budget
    (used with a pl.cdiv grid / zero padding by the callers).
    """
    if hw <= 128 or hw * bytes_per_lane <= budget:
        return int(hw)
    t = (budget // bytes_per_lane) // 128 * 128
    return int(max(128, min(t, hw)))


# ----------------------------------------------------------------------------
# Kernel 1: batch-mean of sigmoid, x: (N, A*C, H*W), grid = (hw_tiles,) ["parallel"]
#   outputs: full mean (A*C, H*W) bf16        -> threshold / top-k selection
#            compact  (2*A, H*W) f32 rows      -> regression path (classes 3 & 5)
# ----------------------------------------------------------------------------
def _make_sigmoid_mean_kernel(num_anchors, num_classes):
    def kernel(x_ref, mean_ref, sel_ref):
        # Batch is folded into the block (N is small for detection), so the mean is a
        # register reduction: no cross-grid accumulator RMW, no init/finalize branches.
        x = x_ref[...].astype(jnp.float32)            # (N, A*C, thw)
        s = 0.5 * jnp.tanh(0.5 * x) + 0.5             # exact sigmoid: 1 EUP + 2 VALU ops
        m = jnp.mean(s, axis=0)                       # (A*C, thw) f32
        mean_ref[...] = m.astype(mean_ref.dtype)      # bf16 writeback (top-k path only)
        # Compact side output: per anchor the two similar-category class rows
        # (3 = 'large-vehicle', 5 = 'contianer'), kept in f32 for the regression.
        for a in range(num_anchors):
            r3 = a * num_classes + 3
            r5 = a * num_classes + 5
            sel_ref[2 * a:2 * a + 1, :] = m[r3:r3 + 1, :]
            sel_ref[2 * a + 1:2 * a + 2, :] = m[r5:r5 + 1, :]
    return kernel


def _sigmoid_batch_mean(x_ncs, num_anchors, num_classes):
    n, ac, hw = x_ncs.shape
    # double-buffered bytes per lane column: f32 input + bf16 full mean + f32 compact rows
    bytes_per_lane = 2 * (n * ac * 4 + ac * 2 + 2 * num_anchors * 4)
    thw = _pick_tile(hw, bytes_per_lane)
    grid = (pl.cdiv(hw, thw),)     # partial last tile is safe: output writes are clipped
    return pl.pallas_call(
        _make_sigmoid_mean_kernel(num_anchors, num_classes),
        out_shape=(jax.ShapeDtypeStruct((ac, hw), jnp.bfloat16),
                   jax.ShapeDtypeStruct((2 * num_anchors, hw), jnp.float32)),
        grid=grid,
        in_specs=[pl.BlockSpec((n, ac, thw), lambda i: (0, 0, i))],
        out_specs=(pl.BlockSpec((ac, thw), lambda i: (0, i)),
                   pl.BlockSpec((2 * num_anchors, thw), lambda i: (0, i))),
        compiler_params=pltpu.CompilerParams(
            dimension_semantics=("parallel",),
            vmem_limit_bytes=_VMEM_LIMIT),
    )(x_ncs)


# ----------------------------------------------------------------------------
# Kernel 2: masked group-wise linregress sufficient statistics.
#   inputs : sel  (A, 2, M) f32  -- row 0 = class-3 ('large-vehicle'), row 1 = class-5
#            keep (A, 1, M) bf16 -- 1.0 where the (anchor, location) row was kept
#   output : (A, 8, 8) f32, stats[p, q] = sum_t F[p, t] * G[q, t]
#            F rows = [1, x, y, x*y, x*x, 0, 0, 0]; G rows = [gx, gy, 0, ...]
#            -> all 10 reductions are one MXU contraction per tile.
# ----------------------------------------------------------------------------
def _reg_stats_kernel(sel_ref, keep_ref, o_ref):
    i = pl.program_id(1)

    @pl.when(i == 0)
    def _():
        o_ref[...] = jnp.zeros_like(o_ref)

    x = sel_ref[0:1, :]                              # (1, tm) 'large-vehicle' scores
    y = sel_ref[1:2, :]                              # (1, tm) 'contianer' scores
    keep = keep_ref[...].astype(jnp.float32)         # (1, tm) kept-row indicator
    gx = jnp.where(x > y, keep, 0.0)                 # group-x indicator
    gy = keep - gx                                   # group-y indicator
    xy = x * y
    xx = x * x
    one = jnp.ones_like(x)
    zero = jnp.zeros_like(x)
    feats = jnp.concatenate([one, x, y, xy, xx, zero, zero, zero], axis=0)        # (8, tm)
    groups = jnp.concatenate([gx, gy, zero, zero, zero, zero, zero, zero], axis=0)  # (8, tm)
    o_ref[...] += jax.lax.dot_general(
        feats, groups, dimension_numbers=(((1,), (1,)), ((), ())),
        preferred_element_type=jnp.float32)          # (8, 8) per-tile partial stats


def _reg_stats(sel, keep):
    num_anchors, _, hw = sel.shape
    bytes_per_lane = 2 * (2 * 4 + 1 * 2)             # dbl-buffered f32 sel rows + bf16 keep
    tm = _pick_tile(hw, bytes_per_lane)
    ntiles = pl.cdiv(hw, tm)
    hw_pad = ntiles * tm
    if hw_pad != hw:
        # Zero-pad (keep=0 => zero contribution) so partial tiles never read garbage.
        sel = jnp.pad(sel, ((0, 0), (0, 0), (0, hw_pad - hw)))
        keep = jnp.pad(keep, ((0, 0), (0, 0), (0, hw_pad - hw)))
    stats = pl.pallas_call(
        _reg_stats_kernel,
        out_shape=jax.ShapeDtypeStruct((num_anchors, 8, 8), jnp.float32),
        grid=(num_anchors, ntiles),
        in_specs=[pl.BlockSpec((None, 2, tm), lambda a, i: (a, 0, i)),
                  pl.BlockSpec((None, 1, tm), lambda a, i: (a, 0, i))],
        out_specs=pl.BlockSpec((None, 8, 8), lambda a, i: (a, 0, 0)),
        compiler_params=pltpu.CompilerParams(
            dimension_semantics=("parallel", "arbitrary"),
            vmem_limit_bytes=_VMEM_LIMIT),
    )(sel, keep)
    return jnp.sum(stats, axis=0)                    # sums are anchor-permutation invariant


# ----------------------------------------------------------------------------
# Full forward, matching SimilarCategoryAngleRegression.forward
# ----------------------------------------------------------------------------
@functools.partial(jax.jit, static_argnames=("num_classes", "score_thr", "topk"))
def similar_category_angle_regression(cls_score, num_classes, score_thr=0.05, topk=2000):
    n, ch, h, w = cls_score.shape
    num_anchors = ch // num_classes
    hw = h * w

    # Free view (no NHWC transpose materialised): (N, A*C, H*W), lane-dense spatial axis.
    x = cls_score.reshape(n, ch, hw)

    # --- hot path 1 (Pallas): sigmoid + batch mean ---
    mean_ac, sel = _sigmoid_batch_mean(x, num_anchors, num_classes)
    # mean_ac : (A*C, H*W) bf16 -- feeds the threshold / top-k selection only.
    # sel     : (2*A, H*W) f32  -- rows (2a, 2a+1) = classes (3, 5) of anchor a.

    # --- selection glue (data-dependent threshold / top-k / unique rows): plain JAX ---
    flat = mean_ac.reshape(-1)                       # flat idx = (a*C + c)*hw + loc
    k = min(topk, flat.shape[0])
    neg_inf = jnp.array(-jnp.inf, dtype=flat.dtype)
    masked = jnp.where(flat > score_thr, flat, neg_inf)
    top_vals, top_idx = jax.lax.top_k(masked, k)
    top_valid = (top_vals > score_thr).astype(jnp.float32)   # drops padding (num_topk < k)
    a_idx = top_idx // (num_classes * hw)
    loc = top_idx % hw
    keep = jnp.zeros((num_anchors * hw,), jnp.float32)
    keep = keep.at[a_idx * hw + loc].max(top_valid)          # unique (anchor, location) rows
    keep = keep.astype(jnp.bfloat16).reshape(num_anchors, 1, hw)

    # --- hot path 2 (Pallas): masked group-wise regression sufficient statistics ---
    stats = _reg_stats(sel.reshape(num_anchors, 2, hw), keep)   # (8, 8)

    def _slope(col):
        cnt, sx, sy, sxy, sxx = col[0], col[1], col[2], col[3], col[4]
        return (cnt * sxy - sx * sy) / (cnt * sxx - sx * sx)

    slope_x = _slope(stats[:, 0])                    # 'large-vehicle' group
    slope_y = _slope(stats[:, 1])                    # 'contianer' group
    tiny = 1e-05
    angle = jnp.arctan(jnp.abs((slope_y - slope_x) / (1.0 + slope_y * slope_x + tiny)))
    sca = jnp.degrees(angle)

    # Reference returns 0.0 when nothing is kept or the 'large-vehicle' group is empty.
    # TODO(synk): scipy.linregress raises on an empty 'contianer' group and on a degenerate
    # (constant-x) group; here those cases yield NaN instead of an exception.
    nx = stats[0, 0]
    return jnp.where(nx > 0, sca, jnp.float32(0.0))


if __name__ == "__main__":
    key = jax.random.PRNGKey(0)
    batch, num_classes, height, width = 2, 8, 16, 16
    num_anchors = 1  # conv channels = num_anchors * num_classes
    cls_score = jax.random.normal(
        key, (batch, num_anchors * num_classes, height, width), dtype=jnp.float32)

    sca = similar_category_angle_regression(cls_score, num_classes)
    sca = jax.block_until_ready(sca)
    print("KERNEL_OK")
</pallas_src>

<mosaic_0001>
module attributes {stable_mosaic.version = 11 : i64} {
  func.func private @main(%arg0: i32) attributes {dimension_semantics = [#tpu.dimension_semantics<core_parallel>], iteration_bounds = array<i64: 2>, tpu.core_type = #tpu.core_type<sc_scalar_subcore>, window_params = []} {
    return
  }
}

module attributes {stable_mosaic.version = 11 : i64} {
  func.func private @main(%arg0: i32) attributes {dimension_semantics = [#tpu.dimension_semantics<core_parallel>], iteration_bounds = array<i64: 2>, tpu.core_type = #tpu.core_type<sc_scalar_subcore>, window_params = []} {
    return
  }
}

module attributes {stable_mosaic.version = 11 : i64} {
  func.func @kernel(%arg0: i32, %arg1: memref<2x8x256xf32, #tpu.memory_space<vmem>>, %arg2: memref<8x256xbf16, #tpu.memory_space<vmem>>, %arg3: memref<2x256xf32, #tpu.memory_space<vmem>>) attributes {dimension_semantics = [#tpu.dimension_semantics<parallel>], iteration_bounds = array<i64: 1>, scalar_prefetch = 0 : i64, scratch_operands = 0 : i64, tpu.core_type = #tpu.core_type<tc>, window_params = [{transform_indices = @transform_0, window_bounds = array<i64: 2, 8, 256>}, {transform_indices = @transform_1, window_bounds = array<i64: 8, 256>}, {transform_indices = @transform_2, window_bounds = array<i64: 2, 256>}]} {
    %c0 = arith.constant 0 : index
    %c0_0 = arith.constant 0 : index
    %c0_1 = arith.constant 0 : index
    %0 = vector.load %arg1[%c0, %c0_0, %c0_1] : memref<2x8x256xf32, #tpu.memory_space<vmem>>, vector<2x8x256xf32>
    %cst = arith.constant 5.000000e-01 : f32
    %1 = vector.broadcast %cst : f32 to vector<2x8x256xf32>
    %2 = arith.mulf %1, %0 : vector<2x8x256xf32>
    %3 = math.tanh %2 : vector<2x8x256xf32>
    %cst_2 = arith.constant 5.000000e-01 : f32
    %4 = vector.broadcast %cst_2 : f32 to vector<2x8x256xf32>
    %5 = arith.mulf %4, %3 : vector<2x8x256xf32>
    %cst_3 = arith.constant 5.000000e-01 : f32
    %6 = vector.broadcast %cst_3 : f32 to vector<2x8x256xf32>
    %7 = arith.addf %5, %6 : vector<2x8x256xf32>
    %cst_4 = arith.constant dense<0.000000e+00> : vector<8x256xf32>
    %8 = vector.multi_reduction <add>, %7, %cst_4 [0] : vector<2x8x256xf32> to vector<8x256xf32>
    %cst_5 = arith.constant 2.000000e+00 : f32
    %9 = vector.broadcast %cst_5 : f32 to vector<8x256xf32>
    %10 = arith.divf %8, %9 : vector<8x256xf32>
    %11 = arith.truncf %10 : vector<8x256xf32> to vector<8x256xbf16>
    %c0_6 = arith.constant 0 : index
    %c0_7 = arith.constant 0 : index
    %12 = vector.load %arg2[%c0_6, %c0_7] : memref<8x256xbf16, #tpu.memory_space<vmem>>, vector<8x256xbf16>
    tpu.vector_store %arg2[%c0_6, %c0_7], %11 {strides = array<i32>} : memref<8x256xbf16, #tpu.memory_space<vmem>>, vector<8x256xbf16>,
    %13 = vector.extract_strided_slice %10 {offsets = [3, 0], sizes = [1, 256], strides = [1, 1]} : vector<8x256xf32> to vector<1x256xf32>
    %c0_8 = arith.constant 0 : index
    %c0_9 = arith.constant 0 : index
    %14 = vector.load %arg3[%c0_8, %c0_9] : memref<2x256xf32, #tpu.memory_space<vmem>>, vector<1x256xf32>
    tpu.vector_store %arg3[%c0_8, %c0_9], %13 {strides = array<i32>} : memref<2x256xf32, #tpu.memory_space<vmem>>, vector<1x256xf32>,
    %15 = vector.extract_strided_slice %10 {offsets = [5, 0], sizes = [1, 256], strides = [1, 1]} : vector<8x256xf32> to vector<1x256xf32>
    %c1 = arith.constant 1 : index
    %c0_10 = arith.constant 0 : index
    %16 = vector.load %arg3[%c1, %c0_10] : memref<2x256xf32, #tpu.memory_space<vmem>>, vector<1x256xf32>
    tpu.vector_store %arg3[%c1, %c0_10], %15 {strides = array<i32>} : memref<2x256xf32, #tpu.memory_space<vmem>>, vector<1x256xf32>,
    return
  }
  func.func @transform_0(%arg0: i32) -> (i32, i32, i32) {
    %c0_i32 = arith.constant 0 : i32
    %c0_i32_0 = arith.constant 0 : i32
    %c0_i32_1 = arith.constant 0 : i32
    return %c0_i32, %c0_i32_0, %arg0 : i32, i32, i32
  }
  func.func @transform_1(%arg0: i32) -> (i32, i32) {
    %c0_i32 = arith.constant 0 : i32
    %c0_i32_0 = arith.constant 0 : i32
    return %c0_i32, %arg0 : i32, i32
  }
  func.func @transform_2(%arg0: i32) -> (i32, i32) {
    %c0_i32 = arith.constant 0 : i32
    %c0_i32_0 = arith.constant 0 : i32
    return %c0_i32, %arg0 : i32, i32
  }
}

module attributes {stable_mosaic.version = 11 : i64} {
  func.func @_reg_stats_kernel(%arg0: i32, %arg1: i32, %arg2: memref<1x2x256xf32, #tpu.memory_space<vmem>>, %arg3: memref<1x1x256xbf16, #tpu.memory_space<vmem>>, %arg4: memref<1x8x8xf32, #tpu.memory_space<vmem>>) attributes {dimension_semantics = [#tpu.dimension_semantics<parallel>, #tpu.dimension_semantics<arbitrary>], iteration_bounds = array<i64: 1, 1>, scalar_prefetch = 0 : i64, scratch_operands = 0 : i64, tpu.core_type = #tpu.core_type<tc>, window_params = [{transform_indices = @transform_0, window_bounds = array<i64: 1, 2, 256>}, {transform_indices = @transform_1, window_bounds = array<i64: 1, 1, 256>}, {transform_indices = @transform_2, window_bounds = array<i64: 1, 8, 8>}]} {
    %c0_i32 = arith.constant 0 : i32
    %0 = arith.cmpi eq, %arg1, %c0_i32 : i32
    %1 = arith.extui %0 : i1 to i32
    %c0_i32_0 = arith.constant 0 : i32
    %2 = arith.cmpi ne, %1, %c0_i32_0 : i32
    scf.if %2 {
      %cst_17 = arith.constant 0.000000e+00 : f32
      %27 = vector.broadcast %cst_17 : f32 to vector<8x8xf32>
      %c0_18 = arith.constant 0 : index
      %c0_19 = arith.constant 0 : index
      %c0_20 = arith.constant 0 : index
      %28 = vector.load %arg4[%c0_18, %c0_19, %c0_20] : memref<1x8x8xf32, #tpu.memory_space<vmem>>, vector<1x8x8xf32>
      %29 = vector.shape_cast %28 : vector<1x8x8xf32> to vector<8x8xf32>
      %30 = vector.shape_cast %27 : vector<8x8xf32> to vector<1x8x8xf32>
      tpu.vector_store %arg4[%c0_18, %c0_19, %c0_20], %30 {strides = array<i32>} : memref<1x8x8xf32, #tpu.memory_space<vmem>>, vector<1x8x8xf32>,
    } else {
    }
    %c0 = arith.constant 0 : index
    %c0_1 = arith.constant 0 : index
    %c0_2 = arith.constant 0 : index
    %3 = vector.load %arg2[%c0, %c0_1, %c0_2] : memref<1x2x256xf32, #tpu.memory_space<vmem>>, vector<1x1x256xf32>
    %4 = vector.shape_cast %3 : vector<1x1x256xf32> to vector<1x256xf32>
    %c0_3 = arith.constant 0 : index
    %c1 = arith.constant 1 : index
    %c0_4 = arith.constant 0 : index
    %5 = vector.load %arg2[%c0_3, %c1, %c0_4] : memref<1x2x256xf32, #tpu.memory_space<vmem>>, vector<1x1x256xf32>
    %6 = vector.shape_cast %5 : vector<1x1x256xf32> to vector<1x256xf32>
    %c0_5 = arith.constant 0 : index
    %c0_6 = arith.constant 0 : index
    %c0_7 = arith.constant 0 : index
    %7 = vector.load %arg3[%c0_5, %c0_6, %c0_7] : memref<1x1x256xbf16, #tpu.memory_space<vmem>>, vector<1x1x256xbf16>
    %8 = vector.shape_cast %7 : vector<1x1x256xbf16> to vector<1x256xbf16>
    %9 = arith.extf %8 : vector<1x256xbf16> to vector<1x256xf32>
    %10 = arith.cmpf ogt, %4, %6 : vector<1x256xf32>
    %cst = arith.constant 0.000000e+00 : f32
    %11 = vector.broadcast %cst : f32 to vector<1x256xf32>
    %12 = arith.select %10, %9, %11 : vector<1x256xi1>, vector<1x256xf32>
    %13 = arith.subf %9, %12 : vector<1x256xf32>
    %14 = arith.mulf %4, %6 : vector<1x256xf32>
    %15 = arith.mulf %4, %4 : vector<1x256xf32>
    %cst_8 = arith.constant 1.000000e+00 : f32
    %16 = vector.broadcast %cst_8 : f32 to vector<1x256xf32>
    %cst_9 = arith.constant 0.000000e+00 : f32
    %17 = vector.broadcast %cst_9 : f32 to vector<1x256xf32>
    %18 = tpu.concatenate %16, %4, %6, %14, %15, %17, %17, %17 in 0 : vector<1x256xf32>, vector<1x256xf32>, vector<1x256xf32>, vector<1x256xf32>, vector<1x256xf32>, vector<1x256xf32>, vector<1x256xf32>, vector<1x256xf32> -> vector<8x256xf32>
    %19 = tpu.concatenate %12, %13, %17, %17, %17, %17, %17, %17 in 0 : vector<1x256xf32>, vector<1x256xf32>, vector<1x256xf32>, vector<1x256xf32>, vector<1x256xf32>, vector<1x256xf32>, vector<1x256xf32>, vector<1x256xf32> -> vector<8x256xf32>
    %c0_10 = arith.constant 0 : index
    %c0_11 = arith.constant 0 : index
    %c0_12 = arith.constant 0 : index
    %20 = vector.load %arg4[%c0_10, %c0_11, %c0_12] : memref<1x8x8xf32, #tpu.memory_space<vmem>>, vector<1x8x8xf32>
    %21 = vector.shape_cast %20 : vector<1x8x8xf32> to vector<8x8xf32>
    %cst_13 = arith.constant dense<0.000000e+00> : vector<8x8xf32>
    %22 = tpu.matmul %18, %19, %cst_13 {dimension_numbers = #tpu.dot_dimension_numbers<[1], [1], [0], [0], [0, 0, 1, 0], [], []>} : vector<8x256xf32>, vector<8x256xf32>, vector<8x8xf32> -> vector<8x8xf32>
    %23 = arith.addf %21, %22 : vector<8x8xf32>
    %c0_14 = arith.constant 0 : index
    %c0_15 = arith.constant 0 : index
    %c0_16 = arith.constant 0 : index
    %24 = vector.load %arg4[%c0_14, %c0_15, %c0_16] : memref<1x8x8xf32, #tpu.memory_space<vmem>>, vector<1x8x8xf32>
    %25 = vector.shape_cast %24 : vector<1x8x8xf32> to vector<8x8xf32>
    %26 = vector.shape_cast %23 : vector<8x8xf32> to vector<1x8x8xf32>
    tpu.vector_store %arg4[%c0_14, %c0_15, %c0_16], %26 {strides = array<i32>} : memref<1x8x8xf32, #tpu.memory_space<vmem>>, vector<1x8x8xf32>,
    return
  }
  func.func @transform_0(%arg0: i32, %arg1: i32) -> (i32, i32, i32) {
    %c0_i32 = arith.constant 0 : i32
    %c0_i32_0 = arith.constant 0 : i32
    return %arg0, %c0_i32, %arg1 : i32, i32, i32
  }
  func.func @transform_1(%arg0: i32, %arg1: i32) -> (i32, i32, i32) {
    %c0_i32 = arith.constant 0 : i32
    %c0_i32_0 = arith.constant 0 : i32
    return %arg0, %c0_i32, %arg1 : i32, i32, i32
  }
  func.func @transform_2(%arg0: i32, %arg1: i32) -> (i32, i32, i32) {
    %c0_i32 = arith.constant 0 : i32
    %c0_i32_0 = arith.constant 0 : i32
    %c0_i32_1 = arith.constant 0 : i32
    return %arg0, %c0_i32, %c0_i32_0 : i32, i32, i32
  }
}

</mosaic_0001>

<bundles_post_ra>
// kernel: similar_category_angle_regression.2
= control target key start
LH: loop header
LB: loop body
LE: loop exit
PB: predicated region body
PF: predicated region fallthrough
CT: control target
= control target key end

     0   :  { %v108_v13 = vmov 1966171168   ;;  %v50_v15 = vlaneseq  ;;  %s145_s0 = inlined_call_operand.vmem [shape: f32[2,8,256], index: 0, kind: input, shape index: {}]   ;;  %s146_s1 = inlined_call_operand.vmem [shape: bf16[8,256], index: 1, kind: output, shape index: {0}]   ;;  %s147_s2 = inlined_call_operand.vmem [shape: f32[2,256], index: 2, kind: output, shape index: {1}]  }
   0x1   :  { %v10_v0 = vld [vmem:[%s145_s0] sm:$0xff]  ;;  %v11_v1 = vld [vmem:[%s145_s0 + $0x8] sm:$0xff]  ;;  %v12_v2 = vld [vmem:[%s145_s0 + $0x10] sm:$0xff]  ;;  %v48_v14 = vunpack.c.l.s4 %v108_v13 }
   0x2   :  { %v13_v3 = vld [vmem:[%s145_s0 + $0x18] sm:$0xff]  ;;  %v14_v4 = vmul.f32 0.5, %v10_v0  ;;  %v15_v5 = vmul.f32 0.5, %v11_v1  ;;  %v16_v6 = vmul.f32 0.5, %v12_v2  ;;  %v51_v24 = vshrl.u32 %v50_v15, 7 }
   0x3   :  { %v17_v7 = vmul.f32 0.5, %v13_v3  ;;  %v49_v23 = vunpack.c.0.s8 %v48_v14  ;;  %vm66_vm0 = vcmp.lt.s32.totalorder %v50_v15, 256 }
   0x4   :  { %100 = vtanh.f32 %v14_v4 }
   0x5   :  { %102 = vtanh.f32 %v15_v5  ;;  %v52_v29 = vsub.s32 %v49_v23, %v51_v24 }
   0x6   :  { %104 = vtanh.f32 %v16_v6 }
   0x7   :  { %106 = vtanh.f32 %v17_v7 }
   0xe   :  { %v101_v8 = vpop.eup %100 }
   0xf   :  { %v103_v9 = vpop.eup %102  ;;  %v22_v10 = vmul.f32 0.5, %v101_v8 }
  0x10   :  { %v105_v11 = vpop.eup %104  ;;  %v23_v12 = vmul.f32 0.5, %v103_v9 }
  0x11   :  { %v107_v16 = vpop.eup %106  ;;  %v24_v17 = vmul.f32 0.5, %v105_v11  ;;  %v26_v18 = vadd.f32 0.5, %v22_v10 }
  0x12   :  { %v25_v19 = vmul.f32 0.5, %v107_v16  ;;  %v27_v20 = vadd.f32 0.5, %v23_v12 }
  0x13   :  { %v28_v21 = vadd.f32 0.5, %v24_v17 }
  0x14   :  { %v29_v22 = vadd.f32 0.5, %v25_v19 }
  0x15   :  { %v30_v25 = vadd.f32 %v28_v21, %v26_v18 }
  0x16   :  { %v31_v26 = vadd.f32 %v29_v22, %v27_v20 }
  0x17   :  { %v33_v27 = vmul.f32 0.5, %v30_v25 }
  0x18   :  { %v34_v28 = vmul.f32 0.5, %v31_v26 }
  0x1a   :  { %v98_v30 = vpack.c.bf16 %v34_v28, %v33_v27  ;;  %v46_v31 = vcombine.low %v33_v27, %v34_v28  ;;  %v69_v32 = vcombine.high %v33_v27, %v34_v28 }
  0x1c   :  { %43 = vst [vmem:[%s146_s1] sm:$0xff] %v98_v30  ;;  %v53_v33 = vrot.slane %v46_v31, %v52_v29  ;;  %v76_v34 = vrot.slane %v69_v32, %v52_v29 }
  0x1e   :  { %v54_v35 = vcombine.high %v53_v33, %v53_v33  ;;  %v77_v36 = vcombine.high %v76_v34, %v76_v34 }
  0x20   :  { %v61_v37 = vrot.slane %v54_v35, %v52_v29  ;;  %v84_v38 = vrot.slane %v77_v36, %v52_v29 }
  0x22   :  { %v62_v39 = vcombine.high %v61_v37, %v61_v37  ;;  %97 = vst.msk [vmem:[%s147_s2 + $0x1] ss:$2 sm:$0x3] %vm66_vm0, %v84_v38 }
  0x24   :  { %68 = vst.msk [vmem:[%s147_s2] ss:$2 sm:$0x3] %vm66_vm0, %v62_v39 }

// kernel: similar_category_angle_regression.3
= control target key start
LH: loop header
LB: loop body
LE: loop exit
PB: predicated region body
PF: predicated region fallthrough
CT: control target
= control target key end

     0   :  { %v27_v0 = vlaneseq  ;;  %v231_v3 = vmov 1966171168   ;;  %v232_v5 = vmov 857870592   ;;  %vm89_vm1 = vcmask 1040384   ;;  %s298_s0 = inlined_call_operand.vmem [shape: f32[1,2,256], index: 0, kind: input, shape index: {}]   ;;  %s299_s1 = inlined_call_operand.vmem [shape: bf16[1,1,256], index: 1, kind: input, shape index: {}]   ;;  %s300_s2 = inlined_call_operand.vmem [shape: f32[1,8,8], index: 2, kind: output, shape index: {}]  }
   0x1   :  { %v17_v1 = vld [vmem:[%s298_s0] ss:$2 sm:$0x3]  ;;  %v223_v2 = vld [vmem:[%s298_s0 + $0x1] ss:$2 sm:$0x3]  ;;  %v25_v4 = vunpack.c.l.s4 %v231_v3  ;;  %v35_v6 = vunpack.c.l.s4 %v232_v5 }
   0x2   :  { %v20_v7 = vld [vmem:[%s299_s1] sm:$0x3]  ;;  %v28_v8 = vshrl.u32 %v27_v0, 7  ;;  %vm22_vm0 = vcmp.gt.f32.partialorder %v17_v1, %v223_v2  ;;  %vm92_vm2 = vcmask 1041408   ;;  %vm95_vm3 = vcmask 1042432  }
   0x3   :  { %v21_v9 = vunpack.c.l.bf16 %v20_v7  ;;  %v26_v10 = vunpack.c.0.s8 %v25_v4  ;;  %v36_v11 = vunpack.c.0.s8 %v35_v6  ;;  %v43_v16 = vmul.f32 %v223_v2, %v17_v1 }
   0x4   :  { %v52_v12 = vsub.s32 1, %v28_v8  ;;  %v48_v15 = vsub.s32 0, %v28_v8  ;;  %v44_v17 = vmul.f32 %v17_v1, %v17_v1  ;;  %vm98_vm4 = vcmask 1043456  }
   0x5   :  { %v29_v13 = vsub.s32 %v26_v10, %v28_v8  ;;  %v39_v14 = vsub.s32 %v36_v11, %v28_v8  ;;  %vm101_vm5 = vcmask 1044480   ;;  %vm15_vm6 = vcmask 64512  }
   0x6   :  { %v53_v18 = vrot.slane %v17_v1, %v52_v12  ;;  %v64_v19 = vrot.slane %v223_v2, %v52_v12  ;;  %v49_v21 = vrot.slane %v17_v1, %v48_v15  ;;  %v60_v22 = vrot.slane %v223_v2, %v48_v15 }
   0x7   :  { %v30_v20 = vrot.slane %v21_v9, %v29_v13  ;;  %v75_v23 = vrot.slane %v43_v16, %v52_v12  ;;  %v86_v24 = vrot.slane %v44_v17, %v52_v12  ;;  %v127_v30 = vsub.s32 2, %v28_v8 }
   0x8   :  { %v91_v25 = vsel %vm89_vm1, 1.0, %v53_v18  ;;  %v90_v28 = vsel %vm89_vm1, 1.0, %v49_v21  ;;  %v71_v32 = vrot.slane %v43_v16, %v48_v15  ;;  %vm104_vm7 = vcmask 1045504  }
   0x9   :  { %v32_v26 = vsel %vm22_vm0, %v30_v20, 0.0  ;;  %v94_v27 = vsel %vm92_vm2, %v91_v25, %v64_v19  ;;  %v93_v34 = vsel %vm92_vm2, %v90_v28, %v60_v22  ;;  %v233_v39 = vmov 0.0  }
   0xa   :  { %v40_v29 = vrot.slane %v32_v26, %v39_v14  ;;  %v97_v31 = vsel %vm95_vm3, %v94_v27, %v75_v23  ;;  %v117_v36 = vrot.slane %v32_v26, %v52_v12  ;;  %v113_v37 = vrot.slane %v32_v26, %v48_v15  ;;  %16 = vst.msk [vmem:[%s300_s2] sm:$0xff] %vm15_vm6, %v233_v39 }
   0xb   :  { %v100_v33 = vsel %vm98_vm4, %v97_v31, %v86_v24  ;;  %vm107_vm8 = vcmask 1046528   ;;  %v82_v41 = vrot.slane %v44_v17, %v48_v15  ;;  %v96_v44 = vsel %vm95_vm3, %v93_v34, %v71_v32 }
   0xc   :  { %v42_v35 = vsub.f32 %v21_v9, %v40_v29  ;;  %v103_v38 = vsel %vm101_vm5, %v100_v33, 0.0 }
   0xd   :  { %v106_v40 = vsel %vm104_vm7, %v103_v38, 0.0  ;;  %v99_v49 = vsel %vm98_vm4, %v96_v44, %v82_v41 }
   0xe   :  { %v128_v42 = vrot.slane %v42_v35, %v127_v30  ;;  %v124_v43 = vrot.slane %v42_v35, %v48_v15  ;;  %226 = vmatprep.mubr.msk.f32.mxu0 %vm107_vm8, %v106_v40  ;;  %v102_v56 = vsel %vm101_vm5, %v99_v49, 0.0 }
   0xf   :  { %v105_v59 = vsel %vm104_vm7, %v102_v56, 0.0 }
  0x10   :  { %v132_v45 = vsel %vm89_vm1, %v117_v36, %v128_v42  ;;  %v131_v46 = vsel %vm89_vm1, %v113_v37, %v124_v43 }
  0x11   :  { %v134_v47 = vsel %vm92_vm2, %v132_v45, 0.0  ;;  %v133_v48 = vsel %vm92_vm2, %v131_v46, 0.0  ;;  %v145_v60 = vld [vmem:[%s300_s2] sm:$0xff] }
  0x12   :  { %v136_v50 = vsel %vm95_vm3, %v134_v47, 0.0  ;;  %v135_v51 = vsel %vm95_vm3, %v133_v48, 0.0 }
  0x13   :  { %v138_v52 = vsel %vm98_vm4, %v136_v50, 0.0  ;;  %v137_v53 = vsel %vm98_vm4, %v135_v51, 0.0 }
  0x14   :  { %v140_v54 = vsel %vm101_vm5, %v138_v52, 0.0  ;;  %v139_v55 = vsel %vm101_vm5, %v137_v53, 0.0 }
  0x15   :  { %v142_v57 = vsel %vm104_vm7, %v140_v54, 0.0  ;;  %v141_v58 = vsel %vm104_vm7, %v139_v55, 0.0 }
  0x16   :  { %224 = vmatprep.subr.msk.mxu0 %vm107_vm8, %v142_v57 }
  0x17   :  { %225 = vmatpush1.xpose.msk.msra.mxu0 %vm107_vm8, %v141_v58 }
  0x1a   :  { %227 = vmatmul.mubr.msk.f32.vlgmr.msra.gmra.mrb[0].mxu0 %vm107_vm8, %v105_v59 }
  0xed   :  { %v212_v61 = vpop.f32.mrb[0].mxu0 }
  0xee   :  { %v216_v62 = vadd.f32 %v212_v61, %v145_v60  ;;  %v214_v63 = vpop.f32.mrb[1].mxu0 }
  0xf0   :  { %218 = vst.msk [vmem:[%s300_s2] sm:$0xff] %vm15_vm6, %v216_v62 }

</bundles_post_ra>
